<compile_context>
chip_gen: v7x
topology: tpu7x:2x2x1
jax: 0.10.0
libtpu: 0.0.40
codegen_flags: <defaults>
</compile_context>

<pallas_src>
import math

import jax
import jax.numpy as jnp
from jax.experimental import pallas as pl
from jax.experimental.pallas import tpu as pltpu

# NOTE: the original PyTorch spec really does use (-1, +1), not the usual (-20, 2).
LOG_SIG_MAX = 1.0
LOG_SIG_MIN = -1.0


def _gaussian_policy_kernel(state_ref, w1_ref, w2_ref, b12_ref, wh_ref, bhc_ref,
                            out_ref):
    """One batch tile of the fused MLP.

    state_ref : (tb, num_inputs)      streamed (f32 or bf16)
    w1_ref    : (num_inputs, hidden)  VMEM-resident
    w2_ref    : (hidden, hidden)      VMEM-resident
    b12_ref   : (2, hidden) f32       row 0 = b1, row 1 = b2
    wh_ref    : (hidden, 2A)          [Wm | Wls], VMEM-resident
    bhc_ref   : (3, 2A) f32           row 0 = [bm | bls], row 1 = lo, row 2 = hi
    out_ref   : (tb, 2A) f32          [mean | log_std]
    """
    mxu_dtype = w1_ref.dtype
    x = state_ref[...]

    # linear1 + relu  (MXU matmul, f32 accumulate)
    h1 = jnp.dot(x, w1_ref[...], preferred_element_type=jnp.float32) + b12_ref[0:1, :]
    h1 = jnp.maximum(h1, 0.0)

    # linear2 + relu
    h2 = jnp.dot(h1.astype(mxu_dtype), w2_ref[...],
                 preferred_element_type=jnp.float32) + b12_ref[1:2, :]
    h2 = jnp.maximum(h2, 0.0)

    # fused heads: one matmul produces [mean | log_std]
    heads = jnp.dot(h2.astype(mxu_dtype), wh_ref[...],
                    preferred_element_type=jnp.float32) + bhc_ref[0:1, :]

    # Per-column clamp via broadcast lo/hi rows (mean cols: -inf/+inf, so only
    # the log_std columns are actually clamped). 2 VALU ops, no iota/select.
    out = jnp.minimum(jnp.maximum(heads, bhc_ref[1:2, :]), bhc_ref[2:3, :])
    out_ref[...] = out.astype(out_ref.dtype)


def _round_up(v, m):
    return -(-v // m) * m


def gaussian_policy_forward(state, packed_params, *, tile_b=4096):
    """Fused MLP forward.

    state:         (B, num_inputs), f32 (cast to the packed-param dtype before streaming)
    packed_params: dict from pack_params()
    returns (mean, log_std), each (B, num_actions) f32
    """
    B, num_inputs = state.shape
    w1 = packed_params["w1"]
    hidden = w1.shape[1]
    two_a = packed_params["w_head"].shape[1]
    num_actions = two_a // 2
    stream_dtype = w1.dtype

    # Stream the state in the same (possibly bf16) dtype as the weights.
    x = state.astype(stream_dtype)

    # ---- batch-tile selection -------------------------------------------
    if B <= 16:
        # Single full-array block (block dims == array dims, so no (8,128) rule).
        tb = B
    else:
        # At least 2 grid steps (so v7x's two TensorCores both get work),
        # sublane-aligned, capped by tile_b.
        tb = min(_round_up(tile_b, 8), _round_up(-(-B // 2), 8))
        # Soft cap: keep double-buffered state+output footprint < ~8 MiB so the
        # default scoped-VMEM limit is fine on every generation (16 MiB on v5e).
        bytes_per_row = 2 * (num_inputs * x.dtype.itemsize + two_a * 4)
        max_tb = max(8, ((8 << 20) // max(bytes_per_row, 1)) // 8 * 8)
        tb = max(8, min(tb, max_tb))

    grid = (pl.cdiv(B, tb),)  # final partial tile handled by Pallas edge blocks

    cost = pl.CostEstimate(
        flops=2 * B * (num_inputs * hidden + hidden * hidden + hidden * two_a),
        transcendentals=0,
        bytes_accessed=B * (num_inputs * x.dtype.itemsize + two_a * 4)
        + (num_inputs * hidden + hidden * hidden + hidden * two_a) * stream_dtype.itemsize
        + (2 * hidden + 3 * two_a) * 4,
    )

    out = pl.pallas_call(
        _gaussian_policy_kernel,
        out_shape=jax.ShapeDtypeStruct((B, two_a), jnp.float32),
        grid_spec=pltpu.PrefetchScalarGridSpec(
            num_scalar_prefetch=0,
            grid=grid,
            in_specs=[
                pl.BlockSpec((tb, num_inputs), lambda i: (i, 0)),      # streamed batch
                pl.BlockSpec((num_inputs, hidden), lambda i: (0, 0)),  # W1 (resident)
                pl.BlockSpec((hidden, hidden), lambda i: (0, 0)),      # W2 (resident)
                pl.BlockSpec((2, hidden), lambda i: (0, 0)),           # [b1; b2]
                pl.BlockSpec((hidden, two_a), lambda i: (0, 0)),       # [Wm | Wls]
                pl.BlockSpec((3, two_a), lambda i: (0, 0)),            # [bias; lo; hi]
            ],
            out_specs=pl.BlockSpec((tb, two_a), lambda i: (i, 0)),
        ),
        compiler_params=pltpu.CompilerParams(
            dimension_semantics=("parallel",),  # batch axis sharded over TCs on v7x
        ),
        cost_estimate=cost,
    )(
        x,
        packed_params["w1"],
        packed_params["w2"],
        packed_params["b12"],
        packed_params["w_head"],
        packed_params["bhc"],
    )

    mean = out[:, :num_actions]
    log_std = out[:, num_actions:]
    return mean, log_std


# ---------------------------------------------------------------------------
# Parameter construction (matches torch: xavier_uniform_(gain=0.1), bias = 0)
# ---------------------------------------------------------------------------

def _xavier_uniform(key, fan_in, fan_out, gain=0.1):
    bound = gain * math.sqrt(6.0 / (fan_in + fan_out))
    return jax.random.uniform(key, (fan_in, fan_out), jnp.float32, -bound, bound)


def init_params(key, num_inputs, num_actions, hidden_dim):
    """Per-layer params, stored (in_features, out_features) so kernel does x @ W."""
    k1, k2, k3, k4 = jax.random.split(key, 4)
    return {
        "w1": _xavier_uniform(k1, num_inputs, hidden_dim),
        "b1": jnp.zeros((1, hidden_dim), jnp.float32),
        "w2": _xavier_uniform(k2, hidden_dim, hidden_dim),
        "b2": jnp.zeros((1, hidden_dim), jnp.float32),
        "wm": _xavier_uniform(k3, hidden_dim, num_actions),
        "bm": jnp.zeros((1, num_actions), jnp.float32),
        "wls": _xavier_uniform(k4, hidden_dim, num_actions),
        "bls": jnp.zeros((1, num_actions), jnp.float32),
    }


def pack_params(params, dtype=jnp.float32):
    """Pack per-layer params into the 5 tensors the kernel consumes (besides state).

    `dtype` controls the streamed matmul-operand dtype (f32 or bf16); biases and
    the clamp bounds stay in f32 since all accumulation is f32.
    """
    dtype = jnp.dtype(dtype)
    num_actions = params["wm"].shape[1]
    lo = jnp.concatenate(
        [jnp.full((1, num_actions), -jnp.inf, jnp.float32),
         jnp.full((1, num_actions), LOG_SIG_MIN, jnp.float32)], axis=1)
    hi = jnp.concatenate(
        [jnp.full((1, num_actions), jnp.inf, jnp.float32),
         jnp.full((1, num_actions), LOG_SIG_MAX, jnp.float32)], axis=1)
    b_head = jnp.concatenate([params["bm"], params["bls"]], axis=1)          # (1, 2A)
    return {
        "w1": params["w1"].astype(dtype),
        "w2": params["w2"].astype(dtype),
        "b12": jnp.concatenate([params["b1"], params["b2"]], axis=0),        # (2, H) f32
        "w_head": jnp.concatenate([params["wm"], params["wls"]], axis=1).astype(dtype),
        "bhc": jnp.concatenate([b_head, lo, hi], axis=0),                    # (3, 2A) f32
    }


def reference_forward(state, params):
    x = jnp.maximum(state @ params["w1"] + params["b1"], 0.0)
    x = jnp.maximum(x @ params["w2"] + params["b2"], 0.0)
    mean = x @ params["wm"] + params["bm"]
    log_std = jnp.clip(x @ params["wls"] + params["bls"], LOG_SIG_MIN, LOG_SIG_MAX)
    return mean, log_std


if __name__ == "__main__":
    key = jax.random.PRNGKey(0)
    k_state, k_params, k_big = jax.random.split(key, 3)

    num_inputs = 32   # flattened observation features
    hidden_dim = 32
    num_actions = 3   # steering, gas, brake

    params = init_params(k_params, num_inputs, num_actions, hidden_dim)
    packed_f32 = pack_params(params, dtype=jnp.float32)

    # --- small batch (single full-array block) ---
    B = 8
    state = jax.random.normal(k_state, (B, num_inputs), jnp.float32)
    mean, log_std = gaussian_policy_forward(state, packed_f32)
    jax.block_until_ready((mean, log_std))

    ref_mean, ref_log_std = reference_forward(state, params)
    assert jnp.allclose(mean, ref_mean, atol=1e-5, rtol=1e-5)
    assert jnp.allclose(log_std, ref_log_std, atol=1e-5, rtol=1e-5)

    # --- larger batch: multi-step batch grid + partial final edge block ---
    Bb = 1000  # non-multiple of the tile -> exercises Pallas edge-block handling
    state_big = jax.random.normal(k_big, (Bb, num_inputs), jnp.float32)
    mean_b, log_std_b = gaussian_policy_forward(state_big, packed_f32, tile_b=256)
    jax.block_until_ready((mean_b, log_std_b))

    ref_mean_b, ref_log_std_b = reference_forward(state_big, params)
    assert mean_b.shape == (Bb, num_actions) and log_std_b.shape == (Bb, num_actions)
    assert jnp.allclose(mean_b, ref_mean_b, atol=1e-5, rtol=1e-5)
    assert jnp.allclose(log_std_b, ref_log_std_b, atol=1e-5, rtol=1e-5)

    # --- bf16-streamed path (halves HBM traffic; accumulation stays f32) ---
    packed_bf16 = pack_params(params, dtype=jnp.bfloat16)
    mean_h, log_std_h = gaussian_policy_forward(state_big, packed_bf16)
    jax.block_until_ready((mean_h, log_std_h))
    assert jnp.allclose(mean_h, ref_mean_b, atol=3e-2, rtol=3e-2)
    assert jnp.allclose(log_std_h, ref_log_std_b, atol=3e-2, rtol=3e-2)

    # TODO(synk): .sample() (rsample + tanh squashing + log-prob correction) uses
    # torch.distributions sampling; only forward() is implemented in-kernel.

    print("KERNEL_OK")
</pallas_src>

<mosaic_0001>
module attributes {stable_mosaic.version = 11 : i64} {
  func.func @_gaussian_policy_kernel(%arg0: i32, %arg1: memref<8x32xf32, #tpu.memory_space<vmem>>, %arg2: memref<32x32xf32, #tpu.memory_space<vmem>>, %arg3: memref<32x32xf32, #tpu.memory_space<vmem>>, %arg4: memref<2x32xf32, #tpu.memory_space<vmem>>, %arg5: memref<32x6xf32, #tpu.memory_space<vmem>>, %arg6: memref<3x6xf32, #tpu.memory_space<vmem>>, %arg7: memref<8x6xf32, #tpu.memory_space<vmem>>) attributes {dimension_semantics = [#tpu.dimension_semantics<parallel>], iteration_bounds = array<i64: 1>, scalar_prefetch = 0 : i64, scratch_operands = 0 : i64, tpu.core_type = #tpu.core_type<tc>, window_params = [{transform_indices = @transform_0, window_bounds = array<i64: 8, 32>}, {pipeline_mode = #tpu.pipeline_mode<synchronous>, transform_indices = @transform_1, window_bounds = array<i64: 32, 32>}, {pipeline_mode = #tpu.pipeline_mode<synchronous>, transform_indices = @transform_2, window_bounds = array<i64: 32, 32>}, {pipeline_mode = #tpu.pipeline_mode<synchronous>, transform_indices = @transform_3, window_bounds = array<i64: 2, 32>}, {pipeline_mode = #tpu.pipeline_mode<synchronous>, transform_indices = @transform_4, window_bounds = array<i64: 32, 6>}, {pipeline_mode = #tpu.pipeline_mode<synchronous>, transform_indices = @transform_5, window_bounds = array<i64: 3, 6>}, {transform_indices = @transform_6, window_bounds = array<i64: 8, 6>}]} {
    %c0 = arith.constant 0 : index
    %c0_0 = arith.constant 0 : index
    %0 = vector.load %arg1[%c0, %c0_0] : memref<8x32xf32, #tpu.memory_space<vmem>>, vector<8x32xf32>
    %c0_1 = arith.constant 0 : index
    %c0_2 = arith.constant 0 : index
    %1 = vector.load %arg2[%c0_1, %c0_2] : memref<32x32xf32, #tpu.memory_space<vmem>>, vector<32x32xf32>
    %cst = arith.constant dense<0.000000e+00> : vector<8x32xf32>
    %2 = tpu.matmul %0, %1, %cst {dimension_numbers = #tpu.dot_dimension_numbers<[1], [0], [0], [1], [0, 0, 1, 1], [], []>} : vector<8x32xf32>, vector<32x32xf32>, vector<8x32xf32> -> vector<8x32xf32>
    %c0_3 = arith.constant 0 : index
    %c0_4 = arith.constant 0 : index
    %3 = vector.load %arg4[%c0_3, %c0_4] : memref<2x32xf32, #tpu.memory_space<vmem>>, vector<1x32xf32>
    %4 = vector.broadcast %3 : vector<1x32xf32> to vector<8x32xf32>
    %5 = arith.addf %2, %4 : vector<8x32xf32>
    %cst_5 = arith.constant 0.000000e+00 : f32
    %6 = vector.broadcast %cst_5 : f32 to vector<8x32xf32>
    %7 = arith.maximumf %5, %6 : vector<8x32xf32>
    %c0_6 = arith.constant 0 : index
    %c0_7 = arith.constant 0 : index
    %8 = vector.load %arg3[%c0_6, %c0_7] : memref<32x32xf32, #tpu.memory_space<vmem>>, vector<32x32xf32>
    %cst_8 = arith.constant dense<0.000000e+00> : vector<8x32xf32>
    %9 = tpu.matmul %7, %8, %cst_8 {dimension_numbers = #tpu.dot_dimension_numbers<[1], [0], [0], [1], [0, 0, 1, 1], [], []>} : vector<8x32xf32>, vector<32x32xf32>, vector<8x32xf32> -> vector<8x32xf32>
    %c1 = arith.constant 1 : index
    %c0_9 = arith.constant 0 : index
    %10 = vector.load %arg4[%c1, %c0_9] : memref<2x32xf32, #tpu.memory_space<vmem>>, vector<1x32xf32>
    %11 = vector.broadcast %10 : vector<1x32xf32> to vector<8x32xf32>
    %12 = arith.addf %9, %11 : vector<8x32xf32>
    %cst_10 = arith.constant 0.000000e+00 : f32
    %13 = vector.broadcast %cst_10 : f32 to vector<8x32xf32>
    %14 = arith.maximumf %12, %13 : vector<8x32xf32>
    %c0_11 = arith.constant 0 : index
    %c0_12 = arith.constant 0 : index
    %15 = vector.load %arg5[%c0_11, %c0_12] : memref<32x6xf32, #tpu.memory_space<vmem>>, vector<32x6xf32>
    %cst_13 = arith.constant dense<0.000000e+00> : vector<8x6xf32>
    %16 = tpu.matmul %14, %15, %cst_13 {dimension_numbers = #tpu.dot_dimension_numbers<[1], [0], [0], [1], [0, 0, 1, 1], [], []>} : vector<8x32xf32>, vector<32x6xf32>, vector<8x6xf32> -> vector<8x6xf32>
    %c0_14 = arith.constant 0 : index
    %c0_15 = arith.constant 0 : index
    %17 = vector.load %arg6[%c0_14, %c0_15] : memref<3x6xf32, #tpu.memory_space<vmem>>, vector<1x6xf32>
    %18 = vector.broadcast %17 : vector<1x6xf32> to vector<8x6xf32>
    %19 = arith.addf %16, %18 : vector<8x6xf32>
    %c1_16 = arith.constant 1 : index
    %c0_17 = arith.constant 0 : index
    %20 = vector.load %arg6[%c1_16, %c0_17] : memref<3x6xf32, #tpu.memory_space<vmem>>, vector<1x6xf32>
    %21 = vector.broadcast %20 : vector<1x6xf32> to vector<8x6xf32>
    %22 = arith.maximumf %19, %21 : vector<8x6xf32>
    %c2 = arith.constant 2 : index
    %c0_18 = arith.constant 0 : index
    %23 = vector.load %arg6[%c2, %c0_18] : memref<3x6xf32, #tpu.memory_space<vmem>>, vector<1x6xf32>
    %24 = vector.broadcast %23 : vector<1x6xf32> to vector<8x6xf32>
    %25 = arith.minimumf %22, %24 : vector<8x6xf32>
    %c0_19 = arith.constant 0 : index
    %c0_20 = arith.constant 0 : index
    %26 = vector.load %arg7[%c0_19, %c0_20] : memref<8x6xf32, #tpu.memory_space<vmem>>, vector<8x6xf32>
    tpu.vector_store %arg7[%c0_19, %c0_20], %25 {strides = array<i32>} : memref<8x6xf32, #tpu.memory_space<vmem>>, vector<8x6xf32>,
    return
  }
  func.func @transform_0(%arg0: i32) -> (i32, i32) {
    %c0_i32 = arith.constant 0 : i32
    %c0_i32_0 = arith.constant 0 : i32
    return %arg0, %c0_i32 : i32, i32
  }
  func.func @transform_1(%arg0: i32) -> (i32, i32) {
    %c0_i32 = arith.constant 0 : i32
    %c0_i32_0 = arith.constant 0 : i32
    %c0_i32_1 = arith.constant 0 : i32
    return %c0_i32, %c0_i32_0 : i32, i32
  }
  func.func @transform_2(%arg0: i32) -> (i32, i32) {
    %c0_i32 = arith.constant 0 : i32
    %c0_i32_0 = arith.constant 0 : i32
    %c0_i32_1 = arith.constant 0 : i32
    return %c0_i32, %c0_i32_0 : i32, i32
  }
  func.func @transform_3(%arg0: i32) -> (i32, i32) {
    %c0_i32 = arith.constant 0 : i32
    %c0_i32_0 = arith.constant 0 : i32
    %c0_i32_1 = arith.constant 0 : i32
    return %c0_i32, %c0_i32_0 : i32, i32
  }
  func.func @transform_4(%arg0: i32) -> (i32, i32) {
    %c0_i32 = arith.constant 0 : i32
    %c0_i32_0 = arith.constant 0 : i32
    %c0_i32_1 = arith.constant 0 : i32
    return %c0_i32, %c0_i32_0 : i32, i32
  }
  func.func @transform_5(%arg0: i32) -> (i32, i32) {
    %c0_i32 = arith.constant 0 : i32
    %c0_i32_0 = arith.constant 0 : i32
    %c0_i32_1 = arith.constant 0 : i32
    return %c0_i32, %c0_i32_0 : i32, i32
  }
  func.func @transform_6(%arg0: i32) -> (i32, i32) {
    %c0_i32 = arith.constant 0 : i32
    %c0_i32_0 = arith.constant 0 : i32
    return %arg0, %c0_i32 : i32, i32
  }
}

</mosaic_0001>

<bundles_post_ra>
// kernel: tpu_custom_call.1
= control target key start
LH: loop header
LB: loop body
LE: loop exit
PB: predicated region body
PF: predicated region fallthrough
CT: control target
= control target key end

     0   :  { %11 = vsyncpa [#allocation3], 0  ;;  %s560_s0 = inlined_call_operand.vmem [shape: f32[8,32], index: 0, kind: input, shape index: {}]   ;;  %s561_s1 = inlined_call_operand.vmem [shape: f32[32,32], index: 1, kind: input, shape index: {}]   ;;  %s562_s2 = inlined_call_operand.hbm [shape: f32[32,32], index: 2, kind: input, shape index: {}]   ;;  %s563_s3 = inlined_call_operand.vmem [shape: f32[2,32], index: 3, kind: input, shape index: {}]   ;;  %s564_s4 = inlined_call_operand.vmem [shape: f32[32,6], index: 4, kind: input, shape index: {}]   ;;  %s565_s5 = inlined_call_operand.vmem [shape: f32[3,6], index: 5, kind: input, shape index: {}]   ;;  %s566_s6 = inlined_call_operand.hbm [shape: f32[8,6], index: 6, kind: output, shape index: {}]  }
   0x1   :  { %12 = vsyncpa [#allocation4], 0  ;;  %s446_s21 = smov [#allocation2]   ;;  %s398_s25 = scalar_lea.hbm %s562_s2, 512 }
   0x2   :  { %s22_s22 = sshll.u32 %s446_s21, 4  ;;  %p399_p0 = scmp.ne.s32.totalorder %s562_s2, %s398_s25  ;;  %s23_s22 = int_to_ptr.vmem [resolvable:$true] %s22_s22 }
   0x3   :  { %p402_p1 = scmp.lt.u32.totalorder %s398_s25, %s562_s2 }
   0x5   :  { %p404_p2 = pnand %p402_p1, %p399_p0 }
   0x7   :  { %407 = shalt.err (!%p404_p2)
}
   0x8   :  { %s408_s30 = scalar_lea.vmem %s23_s22, 512  ;;  %p413_p4 = scmp.lt.s32.totalorder %s23_s22, %s23_s22 }
   0x9   :  { %p409_p3 = scmp.ne.s32.totalorder %s23_s22, %s408_s30  ;;  %p414_p5 = scmp.lt.s32.totalorder %s408_s30, %s408_s30 }
   0xb   :  { %p415_p6 = por %p414_p5, %p413_p4 }
   0xd   :  { %p416_p7 = pnand %p415_p6, %p409_p3 }
   0xf   :  { %419 = shalt.err (!%p416_p7)
}
  0x10   :  { %s447_s7 = smov 128   ;;  %s448_s8 = smov 8  }
  0x11   :  { %28 = dma.hbm_to_vmem [thread:$0]  %s562_s2, 512, %s23_s22, [#allocation3], %s447_s7, %s447_s7, %s448_s8  }
  0x12   :  { %442 = dma.done.wait [#allocation3], 512  }
  0x13   :  { %443 = vsyncadd [#allocation3], 4294966784  ;;  %v449_v0 = vmov 0.0|0.0   ;;  %vm450_vm0 = vmmov 0   ;;  %v451_v1 = vmov 0.0   ;;  %v39_v2 = vld [vmem:[%s561_s1] sm:$0xff] }
  0x14   :  { %373 = vmatprep.subr.bf16.mxu0 %v449_v0  ;;  %348 = vmatprep.mubr.msk.f32.mxu0 %vm450_vm0, %v451_v1  ;;  %v40_v3 = vld [vmem:[%s561_s1 + $0x8] sm:$0xff]  ;;  %v41_v4 = vld [vmem:[%s561_s1 + $0x10] sm:$0xff]  ;;  %v42_v6 = vld [vmem:[%s561_s1 + $0x18] sm:$0xff]  ;;  %vm48_vm1 = vcmask 261120   ;;  %vm300_vm2 = vcmask 48128  }
  0x15   :  { %379 = vmatprep.subr.bf16.mxu1 %v449_v0  ;;  %359 = vmatprep.mubr.msk.f32.mxu1 %vm450_vm0, %v451_v1  ;;  %v374_v5 = vpack.c.bf16 %v40_v3, %v39_v2  ;;  %v123_v7 = vld [vmem:[#allocation2] sm:$0xff]  ;;  %v124_v8 = vld [vmem:[#allocation2 + $0x8] sm:$0xff]  ;;  %v377_v9 = vpack.c.bf16 %v42_v6, %v41_v4  ;;  %v125_v12 = vld [vmem:[#allocation2 + $0x10] sm:$0xff] }
  0x16   :  { %v380_v10 = vpack.c.bf16 %v124_v8, %v123_v7  ;;  %v38_v11 = vld [vmem:[%s560_s0] sm:$0xff]  ;;  %v126_v13 = vld [vmem:[#allocation2 + $0x18] sm:$0xff]  ;;  %v207_v16 = vld [vmem:[%s564_s4 + $0x8] sm:$0xff] }
  0x17   :  { %375 = vmatpush3.bf16.msra.mxu0 %v374_v5  ;;  %v383_v14 = vpack.c.bf16 %v126_v13, %v125_v12  ;;  %v206_v15 = vld [vmem:[%s564_s4] sm:$0xff]  ;;  %v208_v23 = vld [vmem:[%s564_s4 + $0x10] sm:$0xff]  ;;  %v209_v24 = vld [vmem:[%s564_s4 + $0x18] sm:$0xff] }
  0x18   :  { %376 = vmatprep.subr.bf16.mxu0 %v449_v0  ;;  %381 = vmatpush3.bf16.msra.mxu1 %v380_v10  ;;  %v386_v17 = vpack.c.bf16 %v207_v16, %v206_v15  ;;  %v317_v18 = vld [vmem:[%s563_s3] ss:$0 sm:$0xff]  ;;  %v389_v25 = vpack.c.bf16 %v209_v24, %v208_v23  ;;  %v319_v26 = vld [vmem:[%s563_s3 + $0x1] ss:$0 sm:$0xff]  ;;  %v324_v36 = vld [vmem:[%s565_s5 + $0x2] ss:$0 sm:$0xff] }
  0x19   :  { %382 = vmatprep.subr.bf16.mxu1 %v449_v0  ;;  %v321_v31 = vld [vmem:[%s565_s5] ss:$0 sm:$0xff]  ;;  %v323_v33 = vld [vmem:[%s565_s5 + $0x1] ss:$0 sm:$0xff]  ;;  %s452_s3 = smov [#allocation5]  }
  0x1a   :  { %s308_s11 = sshll.u32 %s452_s3, 4  ;;  %s309_s11 = int_to_ptr.vmem [resolvable:$true] %s308_s11 }
  0x1b   :  { %378 = vmatpush3.bf16.msra.mxu0 %v377_v9  ;;  %s420_s12 = scalar_lea.vmem %s309_s11, 128  ;;  %p425_p9 = scmp.lt.s32.totalorder %s309_s11, %s309_s11 }
  0x1c   :  { %385 = vmatprep.subr.bf16.mxu0 %v449_v0  ;;  %384 = vmatpush3.bf16.msra.mxu1 %v383_v14  ;;  %p421_p8 = scmp.ne.s32.totalorder %s309_s11, %s420_s12  ;;  %p426_p10 = scmp.lt.s32.totalorder %s420_s12, %s420_s12 }
  0x1e   :  { %349 = vmatmul.mubr.msk.f32.vlgmr.msra.gmra.mrb[0].mxu0 %vm48_vm1, %v38_v11  ;;  %p427_p11 = por %p426_p10, %p425_p9 }
  0x1f   :  { %370 = vmatprep.mubr.msk.f32.mxu0 %vm450_vm0, %v451_v1  ;;  %387 = vmatpush3.bf16.msra.mxu0 %v386_v17 }
  0x20   :  { %388 = vmatprep.subr.bf16.mxu0 %v449_v0  ;;  %p428_p12 = pnand %p427_p11, %p421_p8 }
  0x23   :  { %390 = vmatpush3.bf16.msra.mxu0 %v389_v25 }
  0xf1   :  { %v118_v19 = vpop.f32.mrb[0].mxu0 }
  0xf2   :  { %v119_v20 = vadd.f32 %v317_v18, %v118_v19  ;;  %v350_v21 = vpop.f32.mrb[1].mxu0 }
  0xf4   :  { %v122_v22 = vmax.f32 %v119_v20, 0.0 }
  0xf6   :  { %360 = vmatmul.mubr.msk.f32.vlgmr.msra.gmra.mrb[0].mxu1 %vm48_vm1, %v122_v22 }
 0x1c9   :  { %v201_v27 = vpop.f32.mrb[0].mxu1 }
 0x1ca   :  { %v202_v28 = vadd.f32 %v319_v26, %v201_v27  ;;  %v361_v29 = vpop.f32.mrb[1].mxu1 }
 0x1cc   :  { %v205_v30 = vmax.f32 %v202_v28, 0.0 }
 0x1ce   :  { %371 = vmatmul.mubr.msk.f32.vlgmr.msra.gmra.mrb[2].mxu0 %vm48_vm1, %v205_v30 }
 0x2a1   :  { %v284_v32 = vpop.f32.mrb[2].mxu0 }
 0x2a2   :  { %v285_v34 = vadd.f32 %v321_v31, %v284_v32  ;;  %v372_v35 = vpop.f32.mrb[3].mxu0 }
 0x2a4   :  { %v293_v37 = vmax.f32 %v285_v34, %v323_v33 }
 0x2a6   :  { %v299_v38 = vmin.f32 %v293_v37, %v324_v36 }
 0x2a8   :  { %301 = vst.msk [vmem:[#allocation5] sm:$0xff] %vm300_vm2, %v299_v38 }
 0x2a9   :  { %431 = shalt.err (!%p428_p12)
}
 0x2aa   :  { %s432_s2 = scalar_lea.hbm %s566_s6, 128 }
 0x2ab   :  { %p433_p13 = scmp.ne.s32.totalorder %s566_s6, %s432_s2  ;;  %p436_p0 = scmp.lt.u32.totalorder %s432_s2, %s566_s6 }
 0x2ad   :  { %p438_p1 = pnand %p436_p0, %p433_p13 }
 0x2af   :  { %441 = shalt.err (!%p438_p1)
}
 0x2b0   :  { %311 = dma.vmem_to_hbm [thread:$0]  %s309_s11, 128, %s566_s6, [#allocation4]  }
 0x2b1   :  { %444 = dma.done.wait [#allocation4], 128  }
 0x2b2   :  { %445 = vsyncadd [#allocation4], 4294967168 }
 0x2b3   :  { %315 = vsyncpa [#allocation3], 1 }
 0x2b4   :  { %316 = vsyncpa [#allocation4], 1 }

</bundles_post_ra>
